<compile_context>
chip_gen: v7x
topology: tpu7x:2x2x1
jax: 0.10.0
libtpu: 0.0.40
codegen_flags: <defaults>
</compile_context>

<pallas_src>
import jax
import jax.numpy as jnp
from jax.experimental import pallas as pl
from jax.experimental.pallas import tpu as pltpu


def _odeg_kernel(adj_ref, alpha_ref, mz_ref, xfull_ref, xrows_ref, out_ref):
    """One row-block of nodes per grid step; everything lane-dense 2-D in VMEM."""
    # Node aggregation for this row block: (tn, N) @ (N, L) -> (tn, L), K = N.
    agg = jnp.dot(adj_ref[...], xfull_ref[...], preferred_element_type=jnp.float32)
    # Feature + temporal mixing with the Euler step folded into Mz:
    # (tn, L) @ (L, L) -> (tn, L), K = B*T*F.
    lin = jnp.dot(xrows_ref[...], mz_ref[...], preferred_element_type=jnp.float32)
    # z = (time/2)*sigmoid(alpha) * (adj @ X) + X @ Mz ;  relu.
    z = alpha_ref[...] * agg + lin        # alpha_ref is (tn, 1), broadcasts over lanes
    out_ref[...] = jnp.maximum(z, 0.0).astype(out_ref.dtype)


def odeg_forward(x, adj, alpha, w, d, w2, d2, time, *, num_row_blocks=2):
    """Pallas wrapper. All parameter / layout transforms are cheap XLA glue."""
    B, N, T, Fd = x.shape
    L = B * T * Fd
    f32 = jnp.float32

    # ---- parameter glue (tiny matrices; done once, outside the kernel) ----
    alpha_scaled = (float(time) / 2.0) * jax.nn.sigmoid(alpha.astype(f32)).reshape(N, 1)
    w_eff = jnp.matmul(w.astype(f32) * jnp.clip(d.astype(f32), 0.0, 1.0),
                       w.astype(f32).T, precision='highest')          # (F, F)
    w2_eff = jnp.matmul(w2.astype(f32) * jnp.clip(d2.astype(f32), 0.0, 1.0),
                        w2.astype(f32).T, precision='highest')        # (T, T)

    # M acts on the flattened (t, f) axis:  X @ M == (xw + xw2) flattened.
    eye_tf = jnp.eye(T * Fd, dtype=f32)
    M = (jnp.kron(jnp.eye(T, dtype=f32), w_eff)
         + jnp.kron(w2_eff, jnp.eye(Fd, dtype=f32)))                  # (T*F, T*F)
    # Fold the Euler step:  x + time*(xw + xw2 - 2x) == X @ Mz.
    Mz = eye_tf + float(time) * (M - 2.0 * eye_tf)
    # Batch folded into lanes (columns ordered (b, t, f)) -> block-diagonal over batch.
    Mz_all = jnp.kron(jnp.eye(B, dtype=f32), Mz)                      # (L, L)

    # ---- lane-dense data layout: X is (N, B*T*F); reshape back afterwards ----
    X = jnp.transpose(x, (1, 0, 2, 3)).reshape(N, L).astype(f32)
    adj32 = adj.astype(f32)

    # Row-block grid: 2 "parallel" blocks keeps both v7x TCs busy; near-free on v5e/v6e.
    if N % num_row_blocks != 0 or (N // num_row_blocks) % 8 != 0:
        num_row_blocks = 1
    tn = N // num_row_blocks

    out2d = pl.pallas_call(
        _odeg_kernel,
        out_shape=jax.ShapeDtypeStruct((N, L), x.dtype),
        grid=(num_row_blocks,),
        in_specs=[
            pl.BlockSpec((tn, N), lambda i: (i, 0)),    # adj row block
            pl.BlockSpec((tn, 1), lambda i: (i, 0)),    # (time/2)*sigmoid(alpha) row block
            pl.BlockSpec((L, L), lambda i: (0, 0)),     # fused Euler operator Mz (shared)
            pl.BlockSpec((N, L), lambda i: (0, 0)),     # full X (for adj contraction)
            pl.BlockSpec((tn, L), lambda i: (i, 0)),    # X row block (for X @ Mz)
        ],
        out_specs=pl.BlockSpec((tn, L), lambda i: (i, 0)),
        compiler_params=pltpu.CompilerParams(
            dimension_semantics=("parallel",),
        ),
    )(adj32, alpha_scaled, Mz_all, X, X)

    return jnp.transpose(out2d.reshape(N, B, T, Fd), (1, 0, 2, 3)).astype(x.dtype)


if __name__ == "__main__":
    key = jax.random.PRNGKey(0)
    # batch, num_nodes, temporal_dim, feature_dim  ->  lanes = B*T*F = 128 (lane-dense)
    B, N, T, Fd = 2, 16, 8, 8
    time_scale = 6                # STGCNBlock uses ODEG(..., time=6)

    ks = jax.random.split(key, 7)
    x = jax.random.normal(ks[0], (B, N, T, Fd), dtype=jnp.float32)
    adj = jax.random.uniform(ks[1], (N, N), dtype=jnp.float32) / N     # synthetic A_hat

    # ODEFunc init values plus small perturbations so the kron/Euler fusion is
    # genuinely exercised (pure identity params would make X @ Mz trivially X).
    alpha = 0.8 * jnp.ones((N,), jnp.float32) + 0.1 * jax.random.normal(ks[2], (N,))
    w = jnp.eye(Fd, dtype=jnp.float32) + 0.1 * jax.random.normal(ks[3], (Fd, Fd))
    d = jnp.ones((Fd,), jnp.float32) + 0.2 * jax.random.normal(ks[4], (Fd,))
    w2 = jnp.eye(T, dtype=jnp.float32) + 0.1 * jax.random.normal(ks[5], (T, T))
    d2 = jnp.ones((T,), jnp.float32) + 0.2 * jax.random.normal(ks[6], (T,))

    out = jax.block_until_ready(
        odeg_forward(x, adj, alpha, w, d, w2, d2, time_scale))

    # Pure-JAX reference mirroring the PyTorch ODEG forward (un-fused form).
    def ref(xx):
        a = jax.nn.sigmoid(alpha)[None, :, None, None]
        we = jnp.matmul(w * jnp.clip(d, 0.0, 1.0), w.T, precision='highest')
        w2e = jnp.matmul(w2 * jnp.clip(d2, 0.0, 1.0), w2.T, precision='highest')
        xa = jnp.einsum('ij,kjlm->kilm', adj, xx, precision='highest')
        xw = jnp.einsum('ijkl,lm->ijkm', xx, we, precision='highest')
        xw2 = jnp.einsum('ijkl,km->ijml', xx, w2e, precision='highest')
        f = a / 2 * xa - xx + xw - xx + xw2 - xx + xx   # x0 == x (ODEG.set_x0)
        z = xx + time_scale * f
        return jax.nn.relu(z)

    expected = ref(x)
    max_err = float(jnp.max(jnp.abs(out - expected)))
    assert jnp.allclose(out, expected, atol=2e-3, rtol=2e-3), max_err
    print("KERNEL_OK")
</pallas_src>

<mosaic_0001>
module attributes {stable_mosaic.version = 11 : i64} {
  func.func @_odeg_kernel(%arg0: i32, %arg1: memref<8x16xf32, #tpu.memory_space<vmem>>, %arg2: memref<8x1xf32, #tpu.memory_space<vmem>>, %arg3: memref<128x128xf32, #tpu.memory_space<vmem>>, %arg4: memref<16x128xf32, #tpu.memory_space<vmem>>, %arg5: memref<8x128xf32, #tpu.memory_space<vmem>>, %arg6: memref<8x128xf32, #tpu.memory_space<vmem>>) attributes {dimension_semantics = [#tpu.dimension_semantics<parallel>], iteration_bounds = array<i64: 2>, scalar_prefetch = 0 : i64, scratch_operands = 0 : i64, tpu.core_type = #tpu.core_type<tc>, window_params = [{transform_indices = @transform_0, window_bounds = array<i64: 8, 16>}, {transform_indices = @transform_1, window_bounds = array<i64: 8, 1>}, {pipeline_mode = #tpu.pipeline_mode<synchronous>, transform_indices = @transform_2, window_bounds = array<i64: 128, 128>}, {pipeline_mode = #tpu.pipeline_mode<synchronous>, transform_indices = @transform_3, window_bounds = array<i64: 16, 128>}, {transform_indices = @transform_4, window_bounds = array<i64: 8, 128>}, {transform_indices = @transform_5, window_bounds = array<i64: 8, 128>}]} {
    %c0 = arith.constant 0 : index
    %c0_0 = arith.constant 0 : index
    %0 = vector.load %arg1[%c0, %c0_0] : memref<8x16xf32, #tpu.memory_space<vmem>>, vector<8x16xf32>
    %c0_1 = arith.constant 0 : index
    %c0_2 = arith.constant 0 : index
    %1 = vector.load %arg4[%c0_1, %c0_2] : memref<16x128xf32, #tpu.memory_space<vmem>>, vector<16x128xf32>
    %cst = arith.constant dense<0.000000e+00> : vector<8x128xf32>
    %2 = tpu.matmul %0, %1, %cst {dimension_numbers = #tpu.dot_dimension_numbers<[1], [0], [0], [1], [0, 0, 1, 1], [], []>} : vector<8x16xf32>, vector<16x128xf32>, vector<8x128xf32> -> vector<8x128xf32>
    %c0_3 = arith.constant 0 : index
    %c0_4 = arith.constant 0 : index
    %3 = vector.load %arg5[%c0_3, %c0_4] : memref<8x128xf32, #tpu.memory_space<vmem>>, vector<8x128xf32>
    %c0_5 = arith.constant 0 : index
    %c0_6 = arith.constant 0 : index
    %4 = vector.load %arg3[%c0_5, %c0_6] : memref<128x128xf32, #tpu.memory_space<vmem>>, vector<128x128xf32>
    %cst_7 = arith.constant dense<0.000000e+00> : vector<8x128xf32>
    %5 = tpu.matmul %3, %4, %cst_7 {dimension_numbers = #tpu.dot_dimension_numbers<[1], [0], [0], [1], [0, 0, 1, 1], [], []>} : vector<8x128xf32>, vector<128x128xf32>, vector<8x128xf32> -> vector<8x128xf32>
    %c0_8 = arith.constant 0 : index
    %c0_9 = arith.constant 0 : index
    %6 = vector.load %arg2[%c0_8, %c0_9] : memref<8x1xf32, #tpu.memory_space<vmem>>, vector<8x1xf32>
    %7 = vector.broadcast %6 : vector<8x1xf32> to vector<8x128xf32>
    %8 = arith.mulf %7, %2 : vector<8x128xf32>
    %9 = arith.addf %8, %5 : vector<8x128xf32>
    %cst_10 = arith.constant 0.000000e+00 : f32
    %10 = vector.broadcast %cst_10 : f32 to vector<8x128xf32>
    %11 = arith.maximumf %9, %10 : vector<8x128xf32>
    %c0_11 = arith.constant 0 : index
    %c0_12 = arith.constant 0 : index
    %12 = vector.load %arg6[%c0_11, %c0_12] : memref<8x128xf32, #tpu.memory_space<vmem>>, vector<8x128xf32>
    tpu.vector_store %arg6[%c0_11, %c0_12], %11 {strides = array<i32>} : memref<8x128xf32, #tpu.memory_space<vmem>>, vector<8x128xf32>,
    return
  }
  func.func @transform_0(%arg0: i32) -> (i32, i32) {
    %c0_i32 = arith.constant 0 : i32
    %c0_i32_0 = arith.constant 0 : i32
    return %arg0, %c0_i32 : i32, i32
  }
  func.func @transform_1(%arg0: i32) -> (i32, i32) {
    %c0_i32 = arith.constant 0 : i32
    %c0_i32_0 = arith.constant 0 : i32
    return %arg0, %c0_i32 : i32, i32
  }
  func.func @transform_2(%arg0: i32) -> (i32, i32) {
    %c0_i32 = arith.constant 0 : i32
    %c0_i32_0 = arith.constant 0 : i32
    %c0_i32_1 = arith.constant 0 : i32
    return %c0_i32, %c0_i32_0 : i32, i32
  }
  func.func @transform_3(%arg0: i32) -> (i32, i32) {
    %c0_i32 = arith.constant 0 : i32
    %c0_i32_0 = arith.constant 0 : i32
    %c0_i32_1 = arith.constant 0 : i32
    return %c0_i32, %c0_i32_0 : i32, i32
  }
  func.func @transform_4(%arg0: i32) -> (i32, i32) {
    %c0_i32 = arith.constant 0 : i32
    %c0_i32_0 = arith.constant 0 : i32
    return %arg0, %c0_i32 : i32, i32
  }
  func.func @transform_5(%arg0: i32) -> (i32, i32) {
    %c0_i32 = arith.constant 0 : i32
    %c0_i32_0 = arith.constant 0 : i32
    return %arg0, %c0_i32 : i32, i32
  }
}

</mosaic_0001>

<bundles_post_ra>
// kernel: tpu_custom_call.1
= control target key start
LH: loop header
LB: loop body
LE: loop exit
PB: predicated region body
PF: predicated region fallthrough
CT: control target
= control target key end

     0   :  { %10 = vsyncpa [#allocation3], 0  ;;  %s1100_s0 = inlined_call_operand.vmem [shape: f32[16,16], index: 0, kind: input, shape index: {}]   ;;  %s1101_s1 = inlined_call_operand.vmem [shape: f32[16,1], index: 1, kind: input, shape index: {}]   ;;  %s1102_s2 = inlined_call_operand.hbm [shape: f32[128,128], index: 2, kind: input, shape index: {}]   ;;  %s1103_s3 = inlined_call_operand.hbm [shape: f32[16,128], index: 3, kind: input, shape index: {}]   ;;  %s1104_s4 = inlined_call_operand.vmem [shape: f32[16,128], index: 4, kind: input, shape index: {}]   ;;  %s1105_s5 = inlined_call_operand.hbm [shape: f32[16,128], index: 5, kind: output, shape index: {}]  }
   0x1   :  { %11 = vsyncpa [#allocation6], 0 }
   0x2   :  { %12 = vsyncpa [#allocation4], 0 }
   0x3   :  { %14 = vsyncpa [#allocation4 + $0x1], 0  ;;  %s917_s18 = smov 0   ;;  %s919_s19 = smov 0  }
   0x4   :  { %s921_s20 = smov 0   ;;  %s923_s21 = smov 0  }
   0x5 LB: > { %s938_s22 = sadd.s32 4294967295, %s876_s21   ;;  %s577_s23 = sadd.s32 4294967294, %s876_s21   ;;  %s876_s21 = sphi %s923_s21, %s1123_s21   ;;  %s872_s20 = sphi %s921_s20, %s1122_s20   ;;  %s868_s19 = sphi %s919_s19, %s1121_s19   ;;  %s864_s18 = sphi %s917_s18, %s1120_s18  }
   0x6   : > { %s942_s24 = sadd.s32 1, %s876_s21   ;;  %s147_s25 = sadd.s32 1, %s872_s20 }
   0x7   : > { %s144_s26 = ssub.s32 %s876_s21, %s942_s24  ;;  %p157_p0 = scmp.ne.s32.totalorder %s872_s20, %s868_s19 }
   0x8   : > { %p145_p1 = scmp.eq.s32.totalorder %s144_s26, 0  ;;  %p158_p2 = scmp.eq.s32.totalorder %s938_s22, 1 }
   0x9   : > { %p163_p3 = scmp.ne.s32.totalorder %s868_s19, %s864_s18  ;;  %p164_p4 = scmp.eq.s32.totalorder %s577_s23, 1 }
   0xa   : > { %s953_s27 = scalar_select %p145_p1, %s872_s20, %s147_s25  }
   0xb   : > { %p955_p5 = por %p158_p2, %p157_p0  ;;  %p959_p6 = por %p164_p4, %p163_p3 }
   0xc   : > { %p578_p7 = scmp.ge.s32.totalorder %s876_s21, 1  ;;  %p171_p8 = scmp.lt.s32.totalorder %s876_s21, 3 }
   0xd   : > { %s1109_s28 = scalar_select %p955_p5, 1, 0 }
   0xe   : > { %s1110_s29 = scalar_select %p959_p6, 1, 0 }
   0xf   : > { %p1106_p9 = scmp.eq.s32.totalorder %s938_s22, 0  ;;  %p966_p10 = pnand %p578_p7, %p171_p8 }
  0x10   : > { %s878_s6 = smov [#allocation2]   ;;  %s879_s9 = smov [#allocation5]  }
  0x11   : > { %s1111_s30 = scalar_select %p966_p10, 1, 0 }
  0x12   : > { %s183_s7 = sshll.u32 %s878_s6, 4  ;;  %p693_p11 = pneg %p966_p10  ;;  %s184_s7 = int_to_ptr.vmem [resolvable:$true] %s183_s7 }
  0x13   : > { %s196_s10 = sshll.u32 %s879_s9, 4  ;;  %s750_s13 = scalar_lea.hbm %s1102_s2, 2048  ;;  %s978_s10 = int_to_ptr.vmem [resolvable:$true] %s196_s10 }
  0x14   : > { %p974_p12 = pnand %p1106_p9, %p693_p11  ;;  %p751_p13 = scmp.ne.s32.totalorder %s1102_s2, %s750_s13 }
  0x15   : > { %p757_p3 = scmp.lt.u32.totalorder %s750_s13, %s1102_s2 }
  0x16   : > { %p752_p0 = pneg %p974_p12 }
  0x18   : > { %p753_p1 = pnand %p752_p0, %p751_p13 }
  0x1a   : > { %p754_p2 = pneg %p753_p1 }
  0x1c   : > { %p759_p4 = pnand %p757_p3, %p754_p2 }
  0x1e   : > { %762 = shalt.err (!%p759_p4)
}
  0x1f   : > { %s763_s23 = scalar_lea.vmem %s184_s7, 2048  ;;  %p771_p9 = scmp.lt.s32.totalorder %s184_s7, %s184_s7 }
  0x20   : > { %p764_p7 = scmp.ne.s32.totalorder %s184_s7, %s763_s23  ;;  %p772_p6 = scmp.lt.s32.totalorder %s763_s23, %s763_s23 }
  0x22   : > { %p766_p8 = pnand %p764_p7, %p752_p0  ;;  %p773_p5 = por %p772_p6, %p771_p9 }
  0x24   : > { %p767_p11 = pneg %p766_p8 }
  0x26   : > { %p774_p10 = pnand %p773_p5, %p767_p11 }
  0x28   : > { %777 = shalt.err (!%p774_p10)
}
  0x29   : > { %s880_s25 = smov 128   ;;  %s881_s26 = smov 8  }
  0x2a   : > { %696 = dma.hbm_to_vmem [thread:$0]  (!%p974_p12), %s1102_s2, 2048, %s184_s7, [#allocation3], %s880_s25, %s880_s25, %s881_s26  }
  0x2b   : > { %s778_s13 = scalar_lea.hbm %s1103_s3, 256 }
  0x2c   : > { %p779_p13 = scmp.ne.s32.totalorder %s1103_s3, %s778_s13  ;;  %p785_p9 = scmp.lt.u32.totalorder %s778_s13, %s1103_s3 }
  0x2e   : > { %p781_p5 = pnand %p779_p13, %p752_p0 }
  0x30   : > { %p782_p6 = pneg %p781_p5 }
  0x32   : > { %p787_p10 = pnand %p785_p9, %p782_p6 }
  0x34   : > { %790 = shalt.err (!%p787_p10)
}
  0x35   : > { %s791_s7 = scalar_lea.vmem %s978_s10, 256  ;;  %p799_p4 = scmp.lt.s32.totalorder %s978_s10, %s978_s10 }
  0x36   : > { %p792_p1 = scmp.ne.s32.totalorder %s978_s10, %s791_s7  ;;  %p800_p7 = scmp.lt.s32.totalorder %s791_s7, %s791_s7 }
  0x38   : > { %p794_p2 = pnand %p792_p1, %p752_p0  ;;  %p801_p8 = por %p800_p7, %p799_p4 }
  0x3a   : > { %p795_p3 = pneg %p794_p2 }
  0x3c   : > { %p802_p11 = pnand %p801_p8, %p795_p3 }
  0x3e   : > { %805 = shalt.err (!%p802_p11)
}
  0x3f   : > { %699 = dma.hbm_to_vmem [thread:$0]  (!%p974_p12), %s1103_s3, 256, %s978_s10, [#allocation6], %s880_s25, %s880_s25, %s881_s26  }
  0x40   : > { %p1113_p13 = scmp.ne.s32.totalorder %s1111_s30, 0 }
  0x41   : > { %p1114_p5 = scmp.eq.s32.totalorder (!%p1113_p13), %s938_s22, 0 }
  0x42   : > { %233 = sbr.rel (%p1113_p13) target bundleno = 343 (0x157), region = 40 }
  0x49   : > { %851 = dma.done.wait (%p1114_p5), [#allocation3], 2048   ;;  %p1115_p0 = pmov %p1114_p5 }
  0x4b   : > { %853 = vsyncadd (%p1115_p0), [#allocation3], 4294965248  ;;  %p1116_p6 = pmov %p1115_p0 }
  0x4c   : > { %p1117_p9 = pmov %p1115_p0 }
  0x4d   : > { %855 = dma.done.wait (%p1116_p6), [#allocation6], 256  }
  0x4e   : > { %857 = vsyncadd (%p1117_p9), [#allocation6], 4294967040  ;;  %v882_v0 = vmov 0.0|0.0   ;;  %p272_p12 = scmp.lt.s32.totalorder %s938_s22, 1  ;;  %vm883_vm0 = vmmov 0   ;;  %v884_v1 = vmov 0.0  }
  0x4f   : > { %659 = vmatprep.subr.bf16.mxu1 %v882_v0  ;;  %656 = vmatprep.subr.bf16.mxu0 %v882_v0  ;;  %v885_v2 = vmov 0   ;;  %v362_v3 = vld [vmem:[#allocation2] sm:$0xff]  ;;  %v363_v4 = vld [vmem:[#allocation2 + $0x8] sm:$0xff]  ;;  %v364_v5 = vld [vmem:[#allocation2 + $0x10] sm:$0xff]  ;;  %vm287_vm1 = vcmask 130048   ;;  %s269_s16 = sand.u32 1, %s868_s19  }
  0x50   : > { %618 = vmatprep.mubr.msk.f32.mxu0 %vm883_vm0, %v884_v1  ;;  %653 = vmatprep.mubr.msk.f32.mxu1 %vm883_vm0, %v884_v1  ;;  %s273_s30 = scalar_select %p272_p12, %s938_s22, 1  ;;  %v660_v6 = vpack.c.bf16 %v363_v4, %v362_v3  ;;  %v365_v7 = vld [vmem:[#allocation2 + $0x18] sm:$0xff]  ;;  %v366_v9 = vld [vmem:[#allocation2 + $0x20] sm:$0xff]  ;;  %v367_v10 = vld [vmem:[#allocation2 + $0x28] sm:$0xff] }
  0x51   : > { %749 = vset.pattern.permute.xlu0 %v885_v2  ;;  %v663_v8 = vpack.c.bf16 %v365_v7, %v364_v5  ;;  %v285_v11 = vld [vmem:[#allocation5] sm:$0xff]  ;;  %v286_v12 = vld [vmem:[#allocation5 + $0x8] sm:$0xff]  ;;  %v666_v15 = vpack.c.bf16 %v367_v10, %v366_v9  ;;  %v368_v16 = vld [vmem:[#allocation2 + $0x30] sm:$0xff]  ;;  %s585_s17 = sshll.u32 %s269_s16, 3  ;;  %s591_s7 = sshll.u32 %s938_s22, 7 }
  0x52   : > { %s1039_s8 = sshll.u32 %s273_s30, 3  ;;  %661 = vmatpush3.bf16.msra.mxu1 %v660_v6  ;;  %v657_v13 = vpack.c.bf16 %v286_v12, %v285_v11  ;;  %v369_v17 = vld [vmem:[#allocation2 + $0x38] sm:$0xff]  ;;  %v370_v20 = vld [vmem:[#allocation2 + $0x40] sm:$0xff]  ;;  %v371_v21 = vld [vmem:[#allocation2 + $0x48] sm:$0xff]  ;;  %s271_s23 = scalar_lea.vmem [#allocation7], %s585_s17 }
  0x53   : > { %s279_s26 = scalar_lea.vmem %s1101_s1, %s1039_s8  ;;  %662 = vmatprep.subr.bf16.mxu1 %v882_v0  ;;  %s275_s12 = scalar_lea.vmem %s1100_s0, %s1039_s8  ;;  %v669_v19 = vpack.c.bf16 %v369_v17, %v368_v16  ;;  %v672_v22 = vpack.c.bf16 %v371_v21, %v370_v20  ;;  %v372_v23 = vld [vmem:[#allocation2 + $0x50] sm:$0xff]  ;;  %v373_v24 = vld [vmem:[#allocation2 + $0x58] sm:$0xff]  ;;  %v374_v26 = vld [vmem:[#allocation2 + $0x60] sm:$0xff] }
  0x54   : > { %v448_v14 = vld [vmem:[%s279_s26] sm:$0xff]  ;;  %658 = vmatpush3.bf16.msra.mxu0 %v657_v13  ;;  %v675_v25 = vpack.c.bf16 %v373_v24, %v372_v23  ;;  %v375_v27 = vld [vmem:[#allocation2 + $0x68] sm:$0xff]  ;;  %v376_v29 = vld [vmem:[#allocation2 + $0x70] sm:$0xff]  ;;  %s283_s15 = scalar_lea.vmem %s1104_s4, %s1039_s8  ;;  %s472_s6 = sshll.u32 %s271_s23, 4  ;;  %s1060_s6 = int_to_ptr.vmem [resolvable:$true] %s472_s6 }
  0x55   : > { %451 = vperm.xlu0 %749, %v448_v14   ;;  %v284_v18 = vld [vmem:[%s275_s12] sm:$0xff]  ;;  %v678_v28 = vpack.c.bf16 %v375_v27, %v374_v26  ;;  %v377_v30 = vld [vmem:[#allocation2 + $0x78] sm:$0xff]  ;;  %s1058_s8 = scalar_lea.hbm %s1105_s5, %s591_s7  ;;  %s459_s25 = scalar_lea.sflag [#allocation4], %s269_s16 }
  0x56   : > { %664 = vmatpush3.bf16.msra.mxu1 %v663_v8  ;;  %v681_v31 = vpack.c.bf16 %v377_v30, %v376_v29  ;;  %v361_v32 = vld [vmem:[%s283_s15] sm:$0xff]  ;;  %s806_s26 = scalar_lea.vmem %s1060_s6, 128  ;;  %p1118_p1 = scmp.ne.s32.totalorder %s1109_s28, 0 }
  0x57   : > { %665 = vmatprep.subr.bf16.mxu1 %v882_v0  ;;  %619 = vmatmul.mubr.msk.f32.vlgmr.msra.gmra.mrb[0].mxu0 %vm287_vm1, %v284_v18  ;;  %p807_p10 = scmp.ne.s32.totalorder %s1060_s6, %s806_s26  ;;  %s886_s22 = smov [#allocation7]  }
  0x58   : > { %s810_s9 = sshll.u32 %s886_s22, 4  ;;  %s811_s9 = int_to_ptr.vmem [resolvable:$false] %s810_s9 }
  0x59   : > { %p808_p2 = pnand %p807_p10, %p1118_p1  ;;  %s812_s11 = scalar_lea.vmem %s811_s9, 256 }
  0x5a   : > { %667 = vmatpush3.bf16.msra.mxu1 %v666_v15  ;;  %p813_p4 = scmp.lt.s32.totalorder %s1060_s6, %s811_s9  ;;  %p814_p7 = scmp.lt.s32.totalorder %s812_s11, %s806_s26 }
  0x5b   : > { %668 = vmatprep.subr.bf16.mxu1 %v882_v0  ;;  %p809_p3 = pneg %p808_p2 }
  0x5c   : > { %p815_p8 = por %p814_p7, %p813_p4 }
  0x5e   : > { %670 = vmatpush3.bf16.msra.mxu1 %v669_v19  ;;  %p816_p11 = pnand %p815_p8, %p809_p3 }
  0x5f   : > { %671 = vmatprep.subr.bf16.mxu1 %v882_v0 }
  0x62   : > { %673 = vmatpush3.bf16.msra.mxu1 %v672_v22 }
  0x63   : > { %674 = vmatprep.subr.bf16.mxu1 %v882_v0 }
  0x66   : > { %676 = vmatpush3.bf16.msra.mxu1 %v675_v25 }
  0x67   : > { %677 = vmatprep.subr.bf16.mxu1 %v882_v0 }
  0x6a   : > { %679 = vmatpush3.bf16.msra.mxu1 %v678_v28 }
  0x6b   : > { %680 = vmatprep.subr.bf16.mxu1 %v882_v0 }
  0x6e   : > { %682 = vmatpush3.bf16.msra.mxu1 %v681_v31 }
  0x71   : > { %654 = vmatmul.mubr.f32.vlgmr.msra.gmra.mrb[0].mxu1 %v361_v32 }
  0xd4   : > { %v452_v35 = vpop.permute.xlu0 %451 }
 0x12a   : > { %v357_v33 = vpop.f32.mrb[0].mxu0 }
 0x12b   : > { %v620_v34 = vpop.f32.mrb[1].mxu0  ;;  %v454_v36 = vmul.f32 %v452_v35, %v357_v33 }
 0x144   : > { %v444_v37 = vpop.f32.mrb[0].mxu1 }
 0x145   : > { %v455_v38 = vadd.f32 %v454_v36, %v444_v37  ;;  %v655_v39 = vpop.f32.mrb[1].mxu1 }
 0x147   : > { %v456_v40 = vmax.f32 %v455_v38, 0.0 }
 0x149   : > { %457 = vst [vmem:[%s271_s23] sm:$0xff] %v456_v40 }
 0x14a   : > { %819 = shalt.err (!%p816_p11)
}
 0x14b   : > { %s820_s12 = scalar_lea.hbm %s1058_s8, 128  ;;  %s824_s15 = scalar_lea.hbm %s1105_s5, 256 }
 0x14c   : > { %p821_p13 = scmp.ne.s32.totalorder %s1058_s8, %s820_s12  ;;  %p825_p6 = scmp.lt.u32.totalorder %s1058_s8, %s1105_s5 }
 0x14d   : > { %p826_p9 = scmp.lt.u32.totalorder %s824_s15, %s820_s12  ;;  %p828_p10 = scmp.lt.u32.totalorder %s820_s12, %s1058_s8 }
 0x14e   : > { %p822_p5 = pnand %p821_p13, %p1118_p1 }
 0x14f   : > { %p827_p12 = por %p826_p9, %p825_p6 }
 0x150   : > { %p823_p0 = pneg %p822_p5 }
 0x151   : > { %p829_p2 = por %p828_p10, %p827_p12 }
 0x153   : > { %p830_p3 = pnand %p829_p2, %p823_p0 }
 0x155   : > { %833 = shalt.err (!%p830_p3)
}
 0x156   : > { %691 = dma.vmem_to_hbm [thread:$0]  (%p1118_p1), %s1060_s6, 128, %s1058_s8, %s459_s25  }
 0x157 PF: > { %p708_p4 = scmp.ge.s32.totalorder %s876_s21, 2  ;;  %s484_s7 = sand.u32 1, %s864_s18  }
 0x158   : > { %p1119_p7 = scmp.ne.s32.totalorder %s1110_s29, 0  ;;  %s485_s23 = scalar_lea.sflag [#allocation4], %s484_s7 }
 0x15a   : > { %p701_p8 = pnand %p708_p4, %p1119_p7 }
 0x15c   : > { %859 = dma.done.wait (!%p701_p8), %s485_s23, 128  }
 0x15d   : > { %861 = vsyncadd (!%p701_p8), %s485_s23, 4294967168  ;;  %p17_p11 = scmp.ge.s32.totalorder %s942_s24, 4   ;;  %s1120_s18 = smov %s868_s19 }
 0x15e   : > { %s1121_s19 = smov %s872_s20  ;;  %s1122_s20 = smov %s953_s27 }
 0x15f   : > { %s1123_s21 = smov %s942_s24  ;;  %19 = sbr.rel (!%p17_p11) target bundleno = 5 (0x5), region = 90 }
 0x166   :  { %490 = vsyncpa [#allocation3], 1 }
 0x167   :  { %492 = vsyncpa [#allocation3 + $0x1], 1 }
 0x168   :  { %493 = vsyncpa [#allocation6], 1 }
 0x169   :  { %494 = vsyncpa [#allocation4], 1 }
 0x16a   :  { %496 = vsyncpa [#allocation4 + $0x1], 1 }

</bundles_post_ra>
